<compile_context>
chip_gen: v5e
topology: v5e:2x2
jax: 0.10.0
libtpu: 0.0.40
codegen_flags: <defaults>
</compile_context>

<pallas_src>
import functools

import jax
import jax.numpy as jnp
from jax import lax
from jax.experimental import pallas as pl
from jax.experimental.pallas import tpu as pltpu


def _mha_kernel(x_ref, wqkv_ref, wp_ref, bp_ref, o_ref, qkv_scr, cat_scr, *,
                no_heads, head_size):
    H, hs = no_heads, head_size
    T = x_ref.shape[0]

    # ---- 1. Fused lane-dense QKV projection: one K=C, N=3*H*hs MXU dot. ----
    qkv = jnp.dot(x_ref[...], wqkv_ref[...],
                  preferred_element_type=jnp.float32)            # (T, 3*H*hs) f32
    # Spill straight into a head-major bf16 scratch (chunk i = weight columns
    # [i*hs, (i+1)*hs)).  The head loop below then only needs dynamic indexing on the
    # LEADING scratch axis (cheap address math), never dynamic lane-offset slices.
    for i in range(3 * H):                                       # static trace-time loop
        qkv_scr[i] = qkv[:, i * hs:(i + 1) * hs].astype(jnp.bfloat16)

    # Causal mask shared across heads (keep where col <= row) — the module's tril.
    row = lax.broadcasted_iota(jnp.int32, (T, T), 0)
    col = lax.broadcasted_iota(jnp.int32, (T, T), 1)
    tril = col <= row

    score_dims = (((1,), (1,)), ((), ()))                        # contract head dim; no transpose

    # ---- 2. Per-head attention; fori_loop bounds live (T,T) temporaries to one head. ----
    def head_body(h, carry):
        k = qkv_scr[h]                                           # (T, hs) bf16
        q = qkv_scr[H + h]                                       # 1/sqrt(hs) folded into Wq
        v = qkv_scr[2 * H + h]

        # NOTE: the reference module really computes affin = k @ q^T (key-major scores).
        # Do NOT "fix" this to q @ k^T — it would silently change semantics.
        affin = lax.dot_general(k, q, score_dims,
                                preferred_element_type=jnp.float32)   # (T, T) f32
        affin = jnp.where(tril, affin, -1e30)                    # finite fill; diag always kept

        # Hand-rolled softmax: max / exp / sum, then approx reciprocal (EUP slot).
        m = jnp.max(affin, axis=-1, keepdims=True)
        e = jnp.exp(affin - m)
        s = jnp.sum(e, axis=-1, keepdims=True)
        wei = e * pl.reciprocal(s, approx=True)

        head_out = jnp.dot(wei.astype(jnp.bfloat16), v,
                           preferred_element_type=jnp.float32)   # (T, hs) f32
        cat_scr[h] = head_out.astype(jnp.bfloat16)
        return carry

    lax.fori_loop(0, H, head_body, 0)

    # ---- 3. Head concat + ONE full-depth output projection (K = H*hs). ----
    cat = jnp.concatenate([cat_scr[i] for i in range(H)], axis=1)          # (T, H*hs) bf16
    proj = jnp.dot(cat, wp_ref[...], preferred_element_type=jnp.float32)   # (T, Cp) f32
    o_ref[...] = proj + bp_ref[...]                              # bias broadcast over T


def causal_mha(x, wk, wq, wv, wp, bp, *, no_heads, head_size):
    """Fused causal multi-head attention forward.

    Args (PyTorch layouts):
      x  : (B, T, C) f32
      wk, wq, wv : (H, head_size, C)   per-head nn.Linear(n_embd, head_size, bias=False).weight
      wp : (C, H*head_size)            nn.Linear(H*head_size, n_embd).weight
      bp : (C,)                        projection bias
    Returns: (B, T, C) f32.
    """
    B, T, C = x.shape
    H, hs = no_heads, head_size
    scale = float(hs) ** -0.5
    Cp = ((C + 127) // 128) * 128          # lane-dense embedding dim (zero-padded)

    # Fuse per-head weights into lane-dense slabs; fold the scale into Wq;
    # cast MXU operands to bf16 at the boundary; zero-pad the embedding dim to Cp.
    def fuse(w):                           # (H, hs, C) -> (C, H*hs); column h*hs+d = w[h, d, :]
        return jnp.transpose(w, (2, 0, 1)).reshape(C, H * hs)

    w_qkv = jnp.concatenate([fuse(wk), fuse(wq) * scale, fuse(wv)], axis=1)      # (C, 3*H*hs)
    w_qkv = jnp.pad(w_qkv, ((0, Cp - C), (0, 0))).astype(jnp.bfloat16)           # (Cp, 3*H*hs)
    wp_k = jnp.pad(jnp.transpose(wp), ((0, 0), (0, Cp - C))).astype(jnp.bfloat16)  # (H*hs, Cp)
    bp_2d = jnp.pad(bp.reshape(1, C), ((0, 0), (0, Cp - C))).astype(jnp.float32)   # (1, Cp)
    x_bf = jnp.pad(x, ((0, 0), (0, 0), (0, Cp - C))).astype(jnp.bfloat16)          # (B, T, Cp)

    kernel = functools.partial(_mha_kernel, no_heads=H, head_size=hs)
    out = pl.pallas_call(
        kernel,
        out_shape=jax.ShapeDtypeStruct((B, T, Cp), jnp.float32),
        grid_spec=pltpu.PrefetchScalarGridSpec(
            num_scalar_prefetch=0,
            grid=(B,),
            in_specs=[
                pl.BlockSpec((pl.Squeezed(), T, Cp), lambda b: (b, 0, 0)),   # x (bf16)
                pl.BlockSpec((Cp, 3 * H * hs), lambda b: (0, 0)),            # fused QKV weight
                pl.BlockSpec((H * hs, Cp), lambda b: (0, 0)),                # output proj weight
                pl.BlockSpec((1, Cp), lambda b: (0, 0)),                     # proj bias
            ],
            out_specs=pl.BlockSpec((pl.Squeezed(), T, Cp), lambda b: (b, 0, 0)),
            scratch_shapes=[
                pltpu.VMEM((3 * H, T, hs), jnp.bfloat16),   # head-major qkv
                pltpu.VMEM((H, T, hs), jnp.bfloat16),       # per-head outputs (pre-concat)
            ],
        ),
        compiler_params=pltpu.CompilerParams(
            dimension_semantics=("parallel",),
            vmem_limit_bytes=48 * 1024 * 1024,
        ),
    )(x_bf, w_qkv, wp_k, bp_2d)
    return out[:, :, :C]


def causal_mha_ref(x, wk, wq, wv, wp, bp, *, no_heads, head_size):
    """Pure-JAX f32 reference mirroring the PyTorch forward exactly."""
    B, T, C = x.shape
    tril = jnp.tril(jnp.ones((T, T), dtype=bool))
    outs = []
    for h in range(no_heads):
        k = x @ wk[h].T
        q = x @ wq[h].T
        v = x @ wv[h].T
        affin = (k @ jnp.swapaxes(q, -2, -1)) * (head_size ** -0.5)
        affin = jnp.where(tril, affin, -jnp.inf)
        wei = jax.nn.softmax(affin, axis=-1)
        outs.append(wei @ v)
    cat = jnp.concatenate(outs, axis=-1)
    return cat @ wp.T + bp


if __name__ == "__main__":
    # Small, deterministic shapes consistent with the module's forward.
    batch = 2
    seq = 8            # T (<= BLOCK_SIZE)
    n_embd = 32        # C
    no_heads = 4
    head_size = 8      # n_embd // no_heads

    key = jax.random.PRNGKey(0)
    kx, kk, kq, kv, kpw, kpb = jax.random.split(key, 6)

    x = jax.random.normal(kx, (batch, seq, n_embd), dtype=jnp.float32)

    # PyTorch layouts: per-head Linear(n_embd, head_size, bias=False).weight is (hs, C);
    # proj Linear(H*hs, n_embd) has weight (C, H*hs) and bias (C,).
    wk = jax.random.normal(kk, (no_heads, head_size, n_embd), jnp.float32) * 0.02
    wq = jax.random.normal(kq, (no_heads, head_size, n_embd), jnp.float32) * 0.02
    wv = jax.random.normal(kv, (no_heads, head_size, n_embd), jnp.float32) * 0.02
    wp = jax.random.normal(kpw, (n_embd, no_heads * head_size), jnp.float32) * 0.02
    bp = jax.random.normal(kpb, (n_embd,), jnp.float32) * 0.02

    out = causal_mha(x, wk, wq, wv, wp, bp, no_heads=no_heads, head_size=head_size)
    out = jax.block_until_ready(out)

    ref = causal_mha_ref(x, wk, wq, wv, wp, bp, no_heads=no_heads, head_size=head_size)
    assert out.shape == (batch, seq, n_embd)
    # bf16 MXU operands + approx-reciprocal softmax vs the f32 reference -> relaxed tol.
    err = float(jnp.max(jnp.abs(out - ref)))
    assert jnp.allclose(out, ref, atol=2e-2, rtol=2e-2), f"max abs err = {err}"

    print("KERNEL_OK")
</pallas_src>

<mosaic_0001>
module attributes {stable_mosaic.version = 11 : i64} {
  func.func @_mha_kernel(%arg0: i32, %arg1: memref<1x8x128xbf16, #tpu.memory_space<vmem>>, %arg2: memref<128x96xbf16, #tpu.memory_space<vmem>>, %arg3: memref<32x128xbf16, #tpu.memory_space<vmem>>, %arg4: memref<1x128xf32, #tpu.memory_space<vmem>>, %arg5: memref<1x8x128xf32, #tpu.memory_space<vmem>>, %arg6: memref<12x8x8xbf16, #tpu.memory_space<vmem>>, %arg7: memref<4x8x8xbf16, #tpu.memory_space<vmem>>) attributes {dimension_semantics = [#tpu.dimension_semantics<parallel>], iteration_bounds = array<i64: 2>, scalar_prefetch = 0 : i64, scratch_operands = 2 : i64, tpu.core_type = #tpu.core_type<tc>, window_params = [{transform_indices = @transform_0, window_bounds = array<i64: 1, 8, 128>}, {pipeline_mode = #tpu.pipeline_mode<synchronous>, transform_indices = @transform_1, window_bounds = array<i64: 128, 96>}, {pipeline_mode = #tpu.pipeline_mode<synchronous>, transform_indices = @transform_2, window_bounds = array<i64: 32, 128>}, {pipeline_mode = #tpu.pipeline_mode<synchronous>, transform_indices = @transform_3, window_bounds = array<i64: 1, 128>}, {transform_indices = @transform_4, window_bounds = array<i64: 1, 8, 128>}]} {
    %c0 = arith.constant 0 : index
    %c0_0 = arith.constant 0 : index
    %c0_1 = arith.constant 0 : index
    %0 = vector.load %arg1[%c0, %c0_0, %c0_1] : memref<1x8x128xbf16, #tpu.memory_space<vmem>>, vector<1x8x128xbf16>
    %1 = vector.shape_cast %0 : vector<1x8x128xbf16> to vector<8x128xbf16>
    %c0_2 = arith.constant 0 : index
    %c0_3 = arith.constant 0 : index
    %2 = vector.load %arg2[%c0_2, %c0_3] : memref<128x96xbf16, #tpu.memory_space<vmem>>, vector<128x96xbf16>
    %cst = arith.constant dense<0.000000e+00> : vector<8x96xf32>
    %3 = tpu.matmul %1, %2, %cst {dimension_numbers = #tpu.dot_dimension_numbers<[1], [0], [0], [1], [0, 0, 1, 1], [], []>} : vector<8x128xbf16>, vector<128x96xbf16>, vector<8x96xf32> -> vector<8x96xf32>
    %4 = vector.extract_strided_slice %3 {offsets = [0, 0], sizes = [8, 8], strides = [1, 1]} : vector<8x96xf32> to vector<8x8xf32>
    %5 = arith.truncf %4 : vector<8x8xf32> to vector<8x8xbf16>
    %c0_4 = arith.constant 0 : index
    %c0_5 = arith.constant 0 : index
    %c0_6 = arith.constant 0 : index
    %6 = vector.load %arg6[%c0_4, %c0_5, %c0_6] : memref<12x8x8xbf16, #tpu.memory_space<vmem>>, vector<1x8x8xbf16>
    %7 = vector.shape_cast %6 : vector<1x8x8xbf16> to vector<8x8xbf16>
    %8 = vector.shape_cast %5 : vector<8x8xbf16> to vector<1x8x8xbf16>
    tpu.vector_store %arg6[%c0_4, %c0_5, %c0_6], %8 {strides = array<i32>} : memref<12x8x8xbf16, #tpu.memory_space<vmem>>, vector<1x8x8xbf16>,
    %9 = vector.extract_strided_slice %3 {offsets = [0, 8], sizes = [8, 8], strides = [1, 1]} : vector<8x96xf32> to vector<8x8xf32>
    %10 = arith.truncf %9 : vector<8x8xf32> to vector<8x8xbf16>
    %c1 = arith.constant 1 : index
    %c0_7 = arith.constant 0 : index
    %c0_8 = arith.constant 0 : index
    %11 = vector.load %arg6[%c1, %c0_7, %c0_8] : memref<12x8x8xbf16, #tpu.memory_space<vmem>>, vector<1x8x8xbf16>
    %12 = vector.shape_cast %11 : vector<1x8x8xbf16> to vector<8x8xbf16>
    %13 = vector.shape_cast %10 : vector<8x8xbf16> to vector<1x8x8xbf16>
    tpu.vector_store %arg6[%c1, %c0_7, %c0_8], %13 {strides = array<i32>} : memref<12x8x8xbf16, #tpu.memory_space<vmem>>, vector<1x8x8xbf16>,
    %14 = vector.extract_strided_slice %3 {offsets = [0, 16], sizes = [8, 8], strides = [1, 1]} : vector<8x96xf32> to vector<8x8xf32>
    %15 = arith.truncf %14 : vector<8x8xf32> to vector<8x8xbf16>
    %c2 = arith.constant 2 : index
    %c0_9 = arith.constant 0 : index
    %c0_10 = arith.constant 0 : index
    %16 = vector.load %arg6[%c2, %c0_9, %c0_10] : memref<12x8x8xbf16, #tpu.memory_space<vmem>>, vector<1x8x8xbf16>
    %17 = vector.shape_cast %16 : vector<1x8x8xbf16> to vector<8x8xbf16>
    %18 = vector.shape_cast %15 : vector<8x8xbf16> to vector<1x8x8xbf16>
    tpu.vector_store %arg6[%c2, %c0_9, %c0_10], %18 {strides = array<i32>} : memref<12x8x8xbf16, #tpu.memory_space<vmem>>, vector<1x8x8xbf16>,
    %19 = vector.extract_strided_slice %3 {offsets = [0, 24], sizes = [8, 8], strides = [1, 1]} : vector<8x96xf32> to vector<8x8xf32>
    %20 = arith.truncf %19 : vector<8x8xf32> to vector<8x8xbf16>
    %c3 = arith.constant 3 : index
    %c0_11 = arith.constant 0 : index
    %c0_12 = arith.constant 0 : index
    %21 = vector.load %arg6[%c3, %c0_11, %c0_12] : memref<12x8x8xbf16, #tpu.memory_space<vmem>>, vector<1x8x8xbf16>
    %22 = vector.shape_cast %21 : vector<1x8x8xbf16> to vector<8x8xbf16>
    %23 = vector.shape_cast %20 : vector<8x8xbf16> to vector<1x8x8xbf16>
    tpu.vector_store %arg6[%c3, %c0_11, %c0_12], %23 {strides = array<i32>} : memref<12x8x8xbf16, #tpu.memory_space<vmem>>, vector<1x8x8xbf16>,
    %24 = vector.extract_strided_slice %3 {offsets = [0, 32], sizes = [8, 8], strides = [1, 1]} : vector<8x96xf32> to vector<8x8xf32>
    %25 = arith.truncf %24 : vector<8x8xf32> to vector<8x8xbf16>
    %c4 = arith.constant 4 : index
    %c0_13 = arith.constant 0 : index
    %c0_14 = arith.constant 0 : index
    %26 = vector.load %arg6[%c4, %c0_13, %c0_14] : memref<12x8x8xbf16, #tpu.memory_space<vmem>>, vector<1x8x8xbf16>
    %27 = vector.shape_cast %26 : vector<1x8x8xbf16> to vector<8x8xbf16>
    %28 = vector.shape_cast %25 : vector<8x8xbf16> to vector<1x8x8xbf16>
    tpu.vector_store %arg6[%c4, %c0_13, %c0_14], %28 {strides = array<i32>} : memref<12x8x8xbf16, #tpu.memory_space<vmem>>, vector<1x8x8xbf16>,
    %29 = vector.extract_strided_slice %3 {offsets = [0, 40], sizes = [8, 8], strides = [1, 1]} : vector<8x96xf32> to vector<8x8xf32>
    %30 = arith.truncf %29 : vector<8x8xf32> to vector<8x8xbf16>
    %c5 = arith.constant 5 : index
    %c0_15 = arith.constant 0 : index
    %c0_16 = arith.constant 0 : index
    %31 = vector.load %arg6[%c5, %c0_15, %c0_16] : memref<12x8x8xbf16, #tpu.memory_space<vmem>>, vector<1x8x8xbf16>
    %32 = vector.shape_cast %31 : vector<1x8x8xbf16> to vector<8x8xbf16>
    %33 = vector.shape_cast %30 : vector<8x8xbf16> to vector<1x8x8xbf16>
    tpu.vector_store %arg6[%c5, %c0_15, %c0_16], %33 {strides = array<i32>} : memref<12x8x8xbf16, #tpu.memory_space<vmem>>, vector<1x8x8xbf16>,
    %34 = vector.extract_strided_slice %3 {offsets = [0, 48], sizes = [8, 8], strides = [1, 1]} : vector<8x96xf32> to vector<8x8xf32>
    %35 = arith.truncf %34 : vector<8x8xf32> to vector<8x8xbf16>
    %c6 = arith.constant 6 : index
    %c0_17 = arith.constant 0 : index
    %c0_18 = arith.constant 0 : index
    %36 = vector.load %arg6[%c6, %c0_17, %c0_18] : memref<12x8x8xbf16, #tpu.memory_space<vmem>>, vector<1x8x8xbf16>
    %37 = vector.shape_cast %36 : vector<1x8x8xbf16> to vector<8x8xbf16>
    %38 = vector.shape_cast %35 : vector<8x8xbf16> to vector<1x8x8xbf16>
    tpu.vector_store %arg6[%c6, %c0_17, %c0_18], %38 {strides = array<i32>} : memref<12x8x8xbf16, #tpu.memory_space<vmem>>, vector<1x8x8xbf16>,
    %39 = vector.extract_strided_slice %3 {offsets = [0, 56], sizes = [8, 8], strides = [1, 1]} : vector<8x96xf32> to vector<8x8xf32>
    %40 = arith.truncf %39 : vector<8x8xf32> to vector<8x8xbf16>
    %c7 = arith.constant 7 : index
    %c0_19 = arith.constant 0 : index
    %c0_20 = arith.constant 0 : index
    %41 = vector.load %arg6[%c7, %c0_19, %c0_20] : memref<12x8x8xbf16, #tpu.memory_space<vmem>>, vector<1x8x8xbf16>
    %42 = vector.shape_cast %41 : vector<1x8x8xbf16> to vector<8x8xbf16>
    %43 = vector.shape_cast %40 : vector<8x8xbf16> to vector<1x8x8xbf16>
    tpu.vector_store %arg6[%c7, %c0_19, %c0_20], %43 {strides = array<i32>} : memref<12x8x8xbf16, #tpu.memory_space<vmem>>, vector<1x8x8xbf16>,
    %44 = vector.extract_strided_slice %3 {offsets = [0, 64], sizes = [8, 8], strides = [1, 1]} : vector<8x96xf32> to vector<8x8xf32>
    %45 = arith.truncf %44 : vector<8x8xf32> to vector<8x8xbf16>
    %c8 = arith.constant 8 : index
    %c0_21 = arith.constant 0 : index
    %c0_22 = arith.constant 0 : index
    %46 = vector.load %arg6[%c8, %c0_21, %c0_22] : memref<12x8x8xbf16, #tpu.memory_space<vmem>>, vector<1x8x8xbf16>
    %47 = vector.shape_cast %46 : vector<1x8x8xbf16> to vector<8x8xbf16>
    %48 = vector.shape_cast %45 : vector<8x8xbf16> to vector<1x8x8xbf16>
    tpu.vector_store %arg6[%c8, %c0_21, %c0_22], %48 {strides = array<i32>} : memref<12x8x8xbf16, #tpu.memory_space<vmem>>, vector<1x8x8xbf16>,
    %49 = vector.extract_strided_slice %3 {offsets = [0, 72], sizes = [8, 8], strides = [1, 1]} : vector<8x96xf32> to vector<8x8xf32>
    %50 = arith.truncf %49 : vector<8x8xf32> to vector<8x8xbf16>
    %c9 = arith.constant 9 : index
    %c0_23 = arith.constant 0 : index
    %c0_24 = arith.constant 0 : index
    %51 = vector.load %arg6[%c9, %c0_23, %c0_24] : memref<12x8x8xbf16, #tpu.memory_space<vmem>>, vector<1x8x8xbf16>
    %52 = vector.shape_cast %51 : vector<1x8x8xbf16> to vector<8x8xbf16>
    %53 = vector.shape_cast %50 : vector<8x8xbf16> to vector<1x8x8xbf16>
    tpu.vector_store %arg6[%c9, %c0_23, %c0_24], %53 {strides = array<i32>} : memref<12x8x8xbf16, #tpu.memory_space<vmem>>, vector<1x8x8xbf16>,
    %54 = vector.extract_strided_slice %3 {offsets = [0, 80], sizes = [8, 8], strides = [1, 1]} : vector<8x96xf32> to vector<8x8xf32>
    %55 = arith.truncf %54 : vector<8x8xf32> to vector<8x8xbf16>
    %c10 = arith.constant 10 : index
    %c0_25 = arith.constant 0 : index
    %c0_26 = arith.constant 0 : index
    %56 = vector.load %arg6[%c10, %c0_25, %c0_26] : memref<12x8x8xbf16, #tpu.memory_space<vmem>>, vector<1x8x8xbf16>
    %57 = vector.shape_cast %56 : vector<1x8x8xbf16> to vector<8x8xbf16>
    %58 = vector.shape_cast %55 : vector<8x8xbf16> to vector<1x8x8xbf16>
    tpu.vector_store %arg6[%c10, %c0_25, %c0_26], %58 {strides = array<i32>} : memref<12x8x8xbf16, #tpu.memory_space<vmem>>, vector<1x8x8xbf16>,
    %59 = vector.extract_strided_slice %3 {offsets = [0, 88], sizes = [8, 8], strides = [1, 1]} : vector<8x96xf32> to vector<8x8xf32>
    %60 = arith.truncf %59 : vector<8x8xf32> to vector<8x8xbf16>
    %c11 = arith.constant 11 : index
    %c0_27 = arith.constant 0 : index
    %c0_28 = arith.constant 0 : index
    %61 = vector.load %arg6[%c11, %c0_27, %c0_28] : memref<12x8x8xbf16, #tpu.memory_space<vmem>>, vector<1x8x8xbf16>
    %62 = vector.shape_cast %61 : vector<1x8x8xbf16> to vector<8x8xbf16>
    %63 = vector.shape_cast %60 : vector<8x8xbf16> to vector<1x8x8xbf16>
    tpu.vector_store %arg6[%c11, %c0_27, %c0_28], %63 {strides = array<i32>} : memref<12x8x8xbf16, #tpu.memory_space<vmem>>, vector<1x8x8xbf16>,
    %64 = tpu.iota {dimensions = array<i32: 0>} : vector<8x8xi32>
    %65 = tpu.iota {dimensions = array<i32: 1>} : vector<8x8xi32>
    %66 = arith.cmpi sle, %65, %64 : vector<8x8xi32>
    %c0_i32 = arith.constant 0 : i32
    %c4_i32 = arith.constant 4 : i32
    %67 = arith.addi %c0_i32, %c4_i32 : i32
    %c1_i32 = arith.constant 1 : i32
    scf.for %arg8 = %c0_i32 to %67 step %c1_i32  : i32 {
      %85 = arith.index_cast %arg8 : i32 to index
      %c0_50 = arith.constant 0 : index
      %c0_51 = arith.constant 0 : index
      %86 = vector.load %arg6[%85, %c0_50, %c0_51] : memref<12x8x8xbf16, #tpu.memory_space<vmem>>, vector<1x8x8xbf16>
      %87 = vector.shape_cast %86 : vector<1x8x8xbf16> to vector<8x8xbf16>
      %c4_i32_52 = arith.constant 4 : i32
      %88 = arith.addi %c4_i32_52, %arg8 : i32
      %89 = arith.index_cast %88 : i32 to index
      %c0_53 = arith.constant 0 : index
      %c0_54 = arith.constant 0 : index
      %90 = vector.load %arg6[%89, %c0_53, %c0_54] : memref<12x8x8xbf16, #tpu.memory_space<vmem>>, vector<1x8x8xbf16>
      %91 = vector.shape_cast %90 : vector<1x8x8xbf16> to vector<8x8xbf16>
      %c8_i32 = arith.constant 8 : i32
      %92 = arith.addi %c8_i32, %arg8 : i32
      %93 = arith.index_cast %92 : i32 to index
      %c0_55 = arith.constant 0 : index
      %c0_56 = arith.constant 0 : index
      %94 = vector.load %arg6[%93, %c0_55, %c0_56] : memref<12x8x8xbf16, #tpu.memory_space<vmem>>, vector<1x8x8xbf16>
      %95 = vector.shape_cast %94 : vector<1x8x8xbf16> to vector<8x8xbf16>
      %cst_57 = arith.constant dense<0.000000e+00> : vector<8x8xf32>
      %96 = tpu.matmul %87, %91, %cst_57 {dimension_numbers = #tpu.dot_dimension_numbers<[1], [1], [0], [0], [0, 0, 1, 0], [], []>} : vector<8x8xbf16>, vector<8x8xbf16>, vector<8x8xf32> -> vector<8x8xf32>
      %cst_58 = arith.constant -1.000000e+30 : f32
      %97 = vector.broadcast %cst_58 : f32 to vector<8x8xf32>
      %98 = arith.select %66, %96, %97 : vector<8x8xi1>, vector<8x8xf32>
      %cst_59 = arith.constant dense<0xFF800000> : vector<8xf32>
      %99 = vector.multi_reduction <maximumf>, %98, %cst_59 [1] : vector<8x8xf32> to vector<8xf32>
      %100 = vector.shape_cast %99 : vector<8xf32> to vector<8x1xf32>
      %101 = vector.broadcast %100 : vector<8x1xf32> to vector<8x8xf32>
      %102 = arith.subf %98, %101 : vector<8x8xf32>
      %103 = math.exp %102 : vector<8x8xf32>
      %cst_60 = arith.constant dense<0.000000e+00> : vector<8xf32>
      %104 = vector.multi_reduction <add>, %103, %cst_60 [1] : vector<8x8xf32> to vector<8xf32>
      %105 = vector.shape_cast %104 : vector<8xf32> to vector<8x1xf32>
      %106 = tpu.reciprocal %105 {approx = true} : vector<8x1xf32> -> vector<8x1xf32>
      %107 = vector.broadcast %106 : vector<8x1xf32> to vector<8x8xf32>
      %108 = arith.mulf %103, %107 : vector<8x8xf32>
      %109 = arith.truncf %108 : vector<8x8xf32> to vector<8x8xbf16>
      %cst_61 = arith.constant dense<0.000000e+00> : vector<8x8xf32>
      %110 = tpu.matmul %109, %95, %cst_61 {dimension_numbers = #tpu.dot_dimension_numbers<[1], [0], [0], [1], [0, 0, 1, 1], [], []>} : vector<8x8xbf16>, vector<8x8xbf16>, vector<8x8xf32> -> vector<8x8xf32>
      %111 = arith.truncf %110 : vector<8x8xf32> to vector<8x8xbf16>
      %112 = arith.index_cast %arg8 : i32 to index
      %c0_62 = arith.constant 0 : index
      %c0_63 = arith.constant 0 : index
      %113 = vector.load %arg7[%112, %c0_62, %c0_63] : memref<4x8x8xbf16, #tpu.memory_space<vmem>>, vector<1x8x8xbf16>
      %114 = vector.shape_cast %113 : vector<1x8x8xbf16> to vector<8x8xbf16>
      %115 = vector.shape_cast %111 : vector<8x8xbf16> to vector<1x8x8xbf16>
      tpu.vector_store %arg7[%112, %c0_62, %c0_63], %115 {strides = array<i32>} : memref<4x8x8xbf16, #tpu.memory_space<vmem>>, vector<1x8x8xbf16>,
    }
    %c4_i32_29 = arith.constant 4 : i32
    %c0_30 = arith.constant 0 : index
    %c0_31 = arith.constant 0 : index
    %c0_32 = arith.constant 0 : index
    %68 = vector.load %arg7[%c0_30, %c0_31, %c0_32] : memref<4x8x8xbf16, #tpu.memory_space<vmem>>, vector<1x8x8xbf16>
    %69 = vector.shape_cast %68 : vector<1x8x8xbf16> to vector<8x8xbf16>
    %c1_33 = arith.constant 1 : index
    %c0_34 = arith.constant 0 : index
    %c0_35 = arith.constant 0 : index
    %70 = vector.load %arg7[%c1_33, %c0_34, %c0_35] : memref<4x8x8xbf16, #tpu.memory_space<vmem>>, vector<1x8x8xbf16>
    %71 = vector.shape_cast %70 : vector<1x8x8xbf16> to vector<8x8xbf16>
    %c2_36 = arith.constant 2 : index
    %c0_37 = arith.constant 0 : index
    %c0_38 = arith.constant 0 : index
    %72 = vector.load %arg7[%c2_36, %c0_37, %c0_38] : memref<4x8x8xbf16, #tpu.memory_space<vmem>>, vector<1x8x8xbf16>
    %73 = vector.shape_cast %72 : vector<1x8x8xbf16> to vector<8x8xbf16>
    %c3_39 = arith.constant 3 : index
    %c0_40 = arith.constant 0 : index
    %c0_41 = arith.constant 0 : index
    %74 = vector.load %arg7[%c3_39, %c0_40, %c0_41] : memref<4x8x8xbf16, #tpu.memory_space<vmem>>, vector<1x8x8xbf16>
    %75 = vector.shape_cast %74 : vector<1x8x8xbf16> to vector<8x8xbf16>
    %76 = tpu.concatenate %69, %71, %73, %75 in 1 : vector<8x8xbf16>, vector<8x8xbf16>, vector<8x8xbf16>, vector<8x8xbf16> -> vector<8x32xbf16>
    %c0_42 = arith.constant 0 : index
    %c0_43 = arith.constant 0 : index
    %77 = vector.load %arg3[%c0_42, %c0_43] : memref<32x128xbf16, #tpu.memory_space<vmem>>, vector<32x128xbf16>
    %cst_44 = arith.constant dense<0.000000e+00> : vector<8x128xf32>
    %78 = tpu.matmul %76, %77, %cst_44 {dimension_numbers = #tpu.dot_dimension_numbers<[1], [0], [0], [1], [0, 0, 1, 1], [], []>} : vector<8x32xbf16>, vector<32x128xbf16>, vector<8x128xf32> -> vector<8x128xf32>
    %c0_45 = arith.constant 0 : index
    %c0_46 = arith.constant 0 : index
    %79 = vector.load %arg4[%c0_45, %c0_46] : memref<1x128xf32, #tpu.memory_space<vmem>>, vector<1x128xf32>
    %80 = vector.broadcast %79 : vector<1x128xf32> to vector<8x128xf32>
    %81 = arith.addf %78, %80 : vector<8x128xf32>
    %c0_47 = arith.constant 0 : index
    %c0_48 = arith.constant 0 : index
    %c0_49 = arith.constant 0 : index
    %82 = vector.load %arg5[%c0_47, %c0_48, %c0_49] : memref<1x8x128xf32, #tpu.memory_space<vmem>>, vector<1x8x128xf32>
    %83 = vector.shape_cast %82 : vector<1x8x128xf32> to vector<8x128xf32>
    %84 = vector.shape_cast %81 : vector<8x128xf32> to vector<1x8x128xf32>
    tpu.vector_store %arg5[%c0_47, %c0_48, %c0_49], %84 {strides = array<i32>} : memref<1x8x128xf32, #tpu.memory_space<vmem>>, vector<1x8x128xf32>,
    return
  }
  func.func @transform_0(%arg0: i32) -> (i32, i32, i32) {
    %c0_i32 = arith.constant 0 : i32
    %c0_i32_0 = arith.constant 0 : i32
    %c0_i32_1 = arith.constant 0 : i32
    return %arg0, %c0_i32, %c0_i32_0 : i32, i32, i32
  }
  func.func @transform_1(%arg0: i32) -> (i32, i32) {
    %c0_i32 = arith.constant 0 : i32
    %c0_i32_0 = arith.constant 0 : i32
    %c0_i32_1 = arith.constant 0 : i32
    return %c0_i32, %c0_i32_0 : i32, i32
  }
  func.func @transform_2(%arg0: i32) -> (i32, i32) {
    %c0_i32 = arith.constant 0 : i32
    %c0_i32_0 = arith.constant 0 : i32
    %c0_i32_1 = arith.constant 0 : i32
    return %c0_i32, %c0_i32_0 : i32, i32
  }
  func.func @transform_3(%arg0: i32) -> (i32, i32) {
    %c0_i32 = arith.constant 0 : i32
    %c0_i32_0 = arith.constant 0 : i32
    %c0_i32_1 = arith.constant 0 : i32
    return %c0_i32, %c0_i32_0 : i32, i32
  }
  func.func @transform_4(%arg0: i32) -> (i32, i32, i32) {
    %c0_i32 = arith.constant 0 : i32
    %c0_i32_0 = arith.constant 0 : i32
    %c0_i32_1 = arith.constant 0 : i32
    return %arg0, %c0_i32, %c0_i32_0 : i32, i32, i32
  }
}

</mosaic_0001>

<bundles_post_ra>
// kernel: tpu_custom_call.1
= control target key start
LH: loop header
LB: loop body
LE: loop exit
PB: predicated region body
PF: predicated region fallthrough
CT: control target
= control target key end

     0   :  { %9 = vsyncpa [#allocation5], 0  ;;  %s985_s0 = inlined_call_operand.vmem [shape: bf16[2,8,128], index: 0, kind: input, shape index: {}]   ;;  %s986_s1 = inlined_call_operand.vmem [shape: bf16[128,96], index: 1, kind: input, shape index: {}]   ;;  %s987_s2 = inlined_call_operand.vmem [shape: bf16[32,128], index: 2, kind: input, shape index: {}]   ;;  %s988_s3 = inlined_call_operand.vmem [shape: f32[1,128], index: 3, kind: input, shape index: {}]   ;;  %s989_s4 = inlined_call_operand.hbm [shape: f32[2,8,128], index: 4, kind: output, shape index: {}]  }
   0x1   :  { %11 = vsyncpa [#allocation5 + $0x1], 0  ;;  %s819_s15 = smov 0   ;;  %s821_s16 = smov 0  }
   0x2   :  { %s823_s17 = smov 0   ;;  %s825_s18 = smov 0  }
   0x3 LB: > { %s840_s19 = sadd.s32 4294967295, %s774_s18   ;;  %s569_s20 = sadd.s32 4294967294, %s774_s18   ;;  %s774_s18 = sphi %s825_s18, %s995_s18   ;;  %s770_s17 = sphi %s823_s17, %s994_s17   ;;  %s766_s16 = sphi %s821_s16, %s993_s16   ;;  %s762_s15 = sphi %s819_s15, %s992_s15  }
   0x4   : > { %s844_s21 = sadd.s32 1, %s774_s18   ;;  %s113_s22 = sadd.s32 1, %s770_s17 }
   0x5   : > { %s110_s23 = ssub.s32 %s774_s18, %s844_s21  ;;  %p123_p0 = scmp.ne.s32.totalorder %s770_s17, %s766_s16 }
   0x6   : > { %p111_p1 = scmp.eq.s32.totalorder %s110_s23, 0  ;;  %p124_p2 = scmp.eq.s32.totalorder %s840_s19, 1 }
   0x7   : > { %p129_p3 = scmp.ne.s32.totalorder %s766_s16, %s762_s15  ;;  %p130_p4 = scmp.eq.s32.totalorder %s569_s20, 1 }
   0x8   : > { %s855_s24 = scalar_select %p111_p1, %s770_s17, %s113_s22  }
   0x9   : > { %p857_p5 = por %p124_p2, %p123_p0  ;;  %p861_p6 = por %p130_p4, %p129_p3 }
   0xa   : > { %p572_p7 = scmp.ge.s32.totalorder %s774_s18, 1  ;;  %p164_p8 = scmp.lt.s32.totalorder %s774_s18, 3 }
   0xc   : > { %p165_p9 = pnand %p572_p7, %p164_p8 }
   0xd   : > { %s186_s27 = sand.u32 (!%p165_p9), 1, %s766_s16   ;;  %p189_p10 = scmp.lt.s32.totalorder (!%p165_p9), %s840_s19, 1 }
   0xe   : > { %168 = sbr.rel (%p165_p9) target bundleno = 1117 (0x45d), region = 36  ;;  %s873_s30 = sshll.u32 (!%p165_p9), %s186_s27, 3 }
   0xf   : > { %s780_s9 = smov (!%p165_p9), 88   ;;  %s781_s10 = smov (!%p165_p9), 104  }
  0x10   : > { %s782_s11 = smov (!%p165_p9), 120   ;;  %s783_s12 = smov (!%p165_p9), 80  }
  0x11   : > { %s784_s13 = smov (!%p165_p9), 96   ;;  %s785_s14 = smov (!%p165_p9), 112  }
  0x12   : > { %s787_s22 = smov (!%p165_p9), 64   ;;  %s788_s23 = smov (!%p165_p9), 72  }
  0x13   : > { %v635_v0 = vld [vmem:[%s986_s1 + $0x38] sm:$0xff]  ;;  %v634_v1 = vld [vmem:[%s986_s1 + $0x30] sm:$0xff]  ;;  %v633_v2 = vld [vmem:[%s986_s1 + $0x28] sm:$0xff]  ;;  %s190_s20 = scalar_select %p189_p10, %s840_s19, 1  ;;  %vm273_vm0 = vcmask 60416   ;;  %v331_v14 = vlaneseq }
  0x14   : > { %259 = vmatpush.bf16.msra.mxu0 %v635_v0  ;;  %v632_v3 = vld [vmem:[%s986_s1 + $0x20] sm:$0xff]  ;;  %v631_v4 = vld [vmem:[%s986_s1 + $0x18] sm:$0xff]  ;;  %v630_v5 = vld [vmem:[%s986_s1 + $0x10] sm:$0xff]  ;;  %s790_s29 = smov 48   ;;  %s188_s5 = scalar_lea.vmem [#allocation4], %s873_s30 }
  0x15   : > { %v629_v6 = vld [vmem:[%s986_s1 + $0x8] sm:$0xff]  ;;  %s574_s28 = sshll.u32 %s190_s20, 2  ;;  %v628_v7 = vld [vmem:[%s986_s1] sm:$0xff]  ;;  %s786_s20 = smov 56   ;;  %v904_v16 = vshrl.u32 %v331_v14, 7  ;;  %v334_v17 = vand.u32 127, %v331_v14 }
  0x16   : > { %s192_s8 = scalar_lea.vmem %s985_s0, %s574_s28  ;;  %s789_s28 = smov 40  }
  0x17   : > { %v194_v8 = vld [vmem:[%s192_s8] sm:$0xf]  ;;  %vm335_vm1 = vcmp.le.s32.totalorder %v334_v17, %v904_v16  ;;  %s917_s6 = smov 0  }
  0x18   : > { %260 = vmatpush.bf16.msra.mxu0 %v634_v1 }
  0x1c   : > { %261 = vmatpush.bf16.msra.mxu0 %v633_v2 }
  0x20   : > { %262 = vmatpush.bf16.msra.mxu0 %v632_v3 }
  0x24   : > { %263 = vmatpush.bf16.msra.mxu0 %v631_v4 }
  0x28   : > { %264 = vmatpush.bf16.msra.mxu0 %v630_v5 }
  0x2c   : > { %265 = vmatpush.bf16.msra.mxu0 %v629_v6 }
  0x30   : > { %266 = vmatpush.bf16.msra.mxu0 %v628_v7 }
  0x33   : > { %267 = vmatmul.bf16.vlgmr.msra.gmra.mxu0 %v194_v8 }
  0xb0   : > { %v268_v9 = vpop.f32.mrf.mxu0 }
  0xb1   : > { %v272_v10 = vpack.c.bf16 %v268_v9, %v268_v9 }
  0xb3   : > { %296 = vrot.lane.b32.xlu2 %v272_v10, %s780_s9  ;;  %286 = vrot.lane.b32.xlu1 %v272_v10, %s781_s10  ;;  %274 = vst.msk [vmem:[#allocation2] sm:$0xf] %vm273_vm0, %v272_v10 }
  0xb4   : > { %276 = vrot.lane.b32.xlu0 %v272_v10, %s782_s11 }
  0xb8   : > { %v270_v11 = vpop.f32.mrf.mxu0 }
  0xbb   : > { %301 = vrot.lane.b32.xlu2 %v272_v10, %s783_s12  ;;  %291 = vrot.lane.b32.xlu1 %v272_v10, %s784_s13 }
  0xbc   : > { %281 = vrot.lane.b32.xlu0 %v272_v10, %s785_s14 }
  0xc3   : > { %316 = vrot.lane.b32.xlu2 %v272_v10, %s786_s20  ;;  %311 = vrot.lane.b32.xlu1 %v272_v10, %s787_s22 }
  0xc4   : > { %306 = vrot.lane.b32.xlu0 %v272_v10, %s788_s23 }
  0xcb   : > { %326 = vrot.lane.b32.xlu1 %v272_v10, %s789_s28 }
  0xcc   : > { %321 = vrot.lane.b32.xlu0 %v272_v10, %s790_s29 }
 0x10d   : > { %v297_v12 = vpop.permute.xlu2 %296 }
 0x10e   : > { %300 = vst.msk [vmem:[#allocation2 + $0x14] sm:$0xf] %vm273_vm0, %v297_v12 }
 0x115   : > { %v302_v13 = vpop.permute.xlu2 %301 }
 0x116   : > { %305 = vst.msk [vmem:[#allocation2 + $0x18] sm:$0xf] %vm273_vm0, %v302_v13 }
 0x11d   : > { %v317_v15 = vpop.permute.xlu2 %316 }
 0x11e   : > { %320 = vst.msk [vmem:[#allocation2 + $0x24] sm:$0xf] %vm273_vm0, %v317_v15 }
 0x125   : > { %v287_v18 = vpop.permute.xlu1 %286 }
 0x126   : > { %290 = vst.msk [vmem:[#allocation2 + $0xc] sm:$0xf] %vm273_vm0, %v287_v18  ;;  %v277_v19 = vpop.permute.xlu0 %276 }
 0x127   : > { %280 = vst.msk [vmem:[#allocation2 + $0x4] sm:$0xf] %vm273_vm0, %v277_v19 }
 0x12d   : > { %v292_v20 = vpop.permute.xlu1 %291 }
 0x12e   : > { %295 = vst.msk [vmem:[#allocation2 + $0x10] sm:$0xf] %vm273_vm0, %v292_v20  ;;  %v282_v21 = vpop.permute.xlu0 %281 }
 0x12f   : > { %285 = vst.msk [vmem:[#allocation2 + $0x8] sm:$0xf] %vm273_vm0, %v282_v21 }
 0x135   : > { %v312_v22 = vpop.permute.xlu1 %311 }
 0x136   : > { %315 = vst.msk [vmem:[#allocation2 + $0x20] sm:$0xf] %vm273_vm0, %v312_v22  ;;  %v307_v23 = vpop.permute.xlu0 %306 }
 0x137   : > { %310 = vst.msk [vmem:[#allocation2 + $0x1c] sm:$0xf] %vm273_vm0, %v307_v23 }
 0x13d   : > { %v327_v24 = vpop.permute.xlu1 %326 }
 0x13e   : > { %330 = vst.msk [vmem:[#allocation2 + $0x2c] sm:$0xf] %vm273_vm0, %v327_v24  ;;  %v322_v25 = vpop.permute.xlu0 %321 }
 0x13f   : > { %325 = vst.msk [vmem:[#allocation2 + $0x28] sm:$0xf] %vm273_vm0, %v322_v25 }
 0x140 LB: >> { %s607_s7 = sshll.u32 %s778_s6, 2  ;;  %vm353_vm2 = vcmask 64512   ;;  %vm389_vm3 = vcmask 1043456   ;;  %s341_s6 = sadd.s32 1, %s778_s6   ;;  %s778_s6 = sphi %s917_s6, %s341_s6  }
 0x141   : >> { %s343_s8 = scalar_lea.vmem [#allocation2], %s607_s7  ;;  %s408_s9 = scalar_lea.vmem [#allocation3], %s607_s7 }
 0x142   : >> { %p338_p11 = scmp.ge.s32.totalorder %s341_s6, 4  }
 0x143   : > { %s791_s10 = smov (%p338_p11), 8   ;;  %s792_s11 = smov (%p338_p11), 24   ;;  %v637_v55 = vld [vmem:[%s987_s2 + $0x8] sm:$0xff] (%p338_p11)  ;;  %v636_v56 = vld [vmem:[%s987_s2] sm:$0xff] (%p338_p11)  ;;  %vm436_vm4 = vcmask (%p338_p11), 130048   ;;  %vm439_vm5 = vcmask (%p338_p11), 195584  }
 0x144   : > { %s793_s12 = smov (%p338_p11), 16   ;;  %vm462_vm6 = vcmask (%p338_p11), 261120   ;;  %s625_s23 = sshll.u32 (%p338_p11), %s840_s19, 3  ;;  %v707_v0 = vld [vmem:[%s988_s3] ss:$0 sm:$0xff] (%p338_p11) }
 0x145   : > { %s490_s6 = scalar_lea.hbm (%p338_p11), %s989_s4, %s625_s23  ;;  %s728_s20 = scalar_lea.hbm (%p338_p11), %s989_s4, 16 }
 0x146   : >> { %v609_v26 = vld [vmem:[%s343_s8 + $0x10] sm:$0xf]  ;;  %v344_v28 = vld [vmem:[%s343_s8] sm:$0xf] }
 0x147   : >> { %v358_v27 = vsel %vm353_vm2, %v609_v26, 0  ;;  %v611_v38 = vld [vmem:[%s343_s8 + $0x20] sm:$0xf] }
 0x148   : >> { %367 = vmatpush.bf16.xpose.msra.mxu0 %v358_v27  ;;  %v391_v39 = vsel %vm389_vm3, %v611_v38, 0 }
 0x149   : >> { %400 = vmatpush.bf16.msra.mxu1 %v391_v39 }
 0x14f   : >> { %612 = vmatmul.msk.bf16.vlgmr.msra.gmra.mxu0 %vm353_vm2, %v344_v28 }
 0x150   : > { %471 = vmatpush.bf16.msra.mxu0 (%p338_p11), %v637_v55 }
 0x154   : > { %472 = vmatpush.bf16.msra.mxu0 (%p338_p11), %v636_v56 }
 0x1cc   : >> { %v369_v29 = vpop.f32.mrf.mxu0 }
 0x1cd   : >> { %v373_v30 = vsel %vm335_vm1, %v369_v29, -1e+30 }
 0x1ce   : >> { %v374_v31 = vsel %vm353_vm2, %v373_v30, -inf }
 0x1cf   : >> { %375 = vmax.xlane.f32.xlu0 %v374_v31 }
 0x1d4   : >> { %v371_v32 = vpop.f32.mrf.mxu0 }
 0x242   : >> { %v376_v33 = vpop.xlane.xlu0 %375 }
 0x243   : >> { %v377_v34 = vsub.f32 %v373_v30, %v376_v33 }
 0x245   : >> { %v378_v35 = vmul.f32 1.442695, %v377_v34 }
 0x247   : >> { %703 = vpow2.f32 %v378_v35 }
 0x24d   : >> { %v704_v36 = vpop.eup %703 }
 0x24e   : >> { %v380_v37 = vsel %vm353_vm2, %v704_v36, 0.0 }
 0x24f   : >> { %381 = vadd.xlane.f32.xlu0 %v380_v37 }
 0x2c2   : >> { %v382_v40 = vpop.xlane.xlu0 %381 }
 0x2c3   : >> { %705 = vrcp.f32 %v382_v40 }
 0x2c9   : >> { %v706_v41 = vpop.eup %705 }
 0x2ca   : >> { %v384_v42 = vmul.f32 %v706_v41, %v704_v36 }
 0x2cc   : >> { %v385_v43 = vpack.c.bf16 %v384_v42, %v384_v42 }
 0x2ce   : >> { %613 = vmatmul.msk.bf16.vlgmr.msra.gmra.mxu1 %vm353_vm2, %v385_v43 }
 0x34b   : >> { %v402_v44 = vpop.f32.mrf.mxu1 }
 0x34c   : >> { %v406_v45 = vpack.c.bf16 %v402_v44, %v402_v44 }
 0x34e   : >> { %409 = vst.msk [vmem:[%s408_s9] sm:$0xf] %vm273_vm0, %v406_v45  ;;  %s492_s9 = sshll.u32 (%p338_p11), %s188_s5, 4  ;;  %s493_s9 = int_to_ptr.vmem [resolvable:$true] %s492_s9 }
 0x34f   : > { %340 = sbr.rel (!%p338_p11) target bundleno = 320 (0x140), region = 96 }
 0x353   : >> { %v404_v46 = vpop.f32.mrf.mxu1 }
 0x355   : > { %v412_v47 = vld [vmem:[#allocation3 + $0x4] sm:$0xf]  ;;  %v639_v48 = vld [vmem:[#allocation3 + $0x8] sm:$0xff]   ;;  %v410_v58 = vld [vmem:[#allocation3] sm:$0xf] }
 0x356   : > { %v418_v49 = vunpack.c.l.b16 %v412_v47  ;;  %v641_v50 = vunpack.c.h.b16 %v639_v48  ;;  %v640_v53 = vunpack.c.l.b16 %v639_v48 }
 0x358   : > { %v419_v51 = vpack.c.b16 %v418_v49, %v418_v49  ;;  %v429_v52 = vpack.c.b16 %v641_v50, %v641_v50  ;;  %v424_v54 = vpack.c.b16 %v640_v53, %v640_v53 }
 0x35a   : > { %420 = vrot.lane.b32.xlu0 %v419_v51, %s791_s10  ;;  %430 = vrot.lane.b32.xlu1 %v429_v52, %s792_s11  ;;  %s494_s10 = sshll.u32 %s490_s6, 4  ;;  %s480_s11 = scalar_lea.sflag [#allocation5], %s186_s27  ;;  %s495_s10 = int_to_ptr.hbm [resolvable:$true] %s494_s10 }
 0x35b   : > { %s722_s19 = sshra.s32 %s495_s10, 4  ;;  %s723_s19 = int_to_ptr.hbm [resolvable:$true] %s722_s19 }
 0x35c   : > { %p729_p1 = scmp.lt.s32.totalorder %s723_s19, %s989_s4 }
 0x362   : > { %425 = vrot.lane.b32.xlu0 %v424_v54, %s793_s12  ;;  %s724_s12 = scalar_lea.hbm %s723_s19, 8 }
 0x363   : > { %p725_p12 = scmp.ne.s32.totalorder %s723_s19, %s724_s12  ;;  %p730_p2 = scmp.lt.s32.totalorder %s728_s20, %s724_s12 }
 0x365   : > { %p726_p13 = pnand %p725_p12, %p857_p5  ;;  %p731_p3 = por %p730_p2, %p729_p1 }
 0x367   : > { %p727_p0 = pneg %p726_p13 }
 0x369   : > { %p732_p4 = pnand %p731_p3, %p727_p0 }
 0x3cc   : > { %v421_v57 = vpop.permute.xlu0 %420  ;;  %v431_v59 = vpop.permute.xlu1 %430 }
 0x3cd   : > { %v435_v60 = vsel %vm353_vm2, %v410_v58, %v421_v57 }
 0x3d4   : > { %v426_v61 = vpop.permute.xlu0 %425 }
 0x3d5   : > { %v438_v62 = vsel %vm436_vm4, %v435_v60, %v426_v61 }
 0x3d6   : > { %v441_v63 = vsel %vm439_vm5, %v438_v62, %v431_v59 }
 0x3d7   : > { %623 = vmatmul.msk.bf16.vlgmr.msra.gmra.mxu0 %vm462_vm6, %v441_v63 }
 0x454   : > { %v474_v1 = vpop.f32.mrf.mxu0 }
 0x455   : > { %v475_v2 = vadd.f32 %v707_v0, %v474_v1 }
 0x457   : > { %478 = vst [vmem:[%s188_s5] sm:$0xff] %v475_v2 }
 0x458   : > { %735 = shalt.err (!%p732_p4)
}
 0x459   : > { %642 = dma.vmem_to_hbm [thread:$0]  (%p857_p5), %s493_s9, 128, %s495_s10, %s480_s11  }
 0x45c   : > { %v476_v3 = vpop.f32.mrf.mxu0 }
 0x45d PF: > { %p648_p7 = scmp.ge.s32.totalorder %s774_s18, 2  ;;  %s506_s27 = sand.u32 1, %s762_s15  }
 0x45e   : > { %s507_s30 = scalar_lea.sflag [#allocation5], %s506_s27 }
 0x45f   : > { %p645_p8 = pnand %p648_p7, %p861_p6 }
 0x461   : > { %p646_p9 = pneg %p645_p8 }
 0x463   : > { %757 = dma.done.wait (%p646_p9), %s507_s30, 128  }
 0x464   : > { %759 = vsyncadd (%p646_p9), %s507_s30, 4294967168  ;;  %p14_p10 = scmp.ge.s32.totalorder %s844_s21, 4   ;;  %s992_s15 = smov %s766_s16 }
 0x465   : > { %s993_s16 = smov %s770_s17  ;;  %s994_s17 = smov %s855_s24 }
 0x466   : > { %s995_s18 = smov %s844_s21  ;;  %16 = sbr.rel (!%p14_p10) target bundleno = 3 (0x3), region = 107 }
 0x46b   :  { %513 = vsyncpa [#allocation5], 1 }
 0x46c   :  { %515 = vsyncpa [#allocation5 + $0x1], 1 }

</bundles_post_ra>
